<compile_context>
chip_gen: v5e
topology: v5e:2x2
jax: 0.10.0
libtpu: 0.0.40
codegen_flags: <defaults>
</compile_context>

<pallas_src>
import math

import jax
import jax.numpy as jnp
from jax.experimental import pallas as pl
from jax.experimental.pallas import tpu as pltpu

FEATS = 64            # h * w = 8 * 8  (the Linear's num_features)
PACK = 2              # logical rows packed per 128-lane physical row
LANES = PACK * FEATS  # 128 -> lane-dense last dim


def _linear_kernel(x_ref, wt_ref, b_ref, o_ref):
    # x_ref: (TM, 128)   two 64-wide logical rows per physical row
    # wt_ref: (128, 128) block-diag(W^T, W^T)  (resident: constant index_map)
    # b_ref: (1, 128)    bias tiled to both 64-lane halves
    acc = jnp.dot(x_ref[...], wt_ref[...], preferred_element_type=jnp.float32)
    o_ref[...] = (acc + b_ref[...]).astype(o_ref.dtype)


def pack_broadcast_params(weight, bias):
    """Precompute lane-dense packed params. Call ONCE at init, not per forward.

    weight: (64, 64) PyTorch nn.Linear weight (out x in), bias: (64,).
    Returns (w_packed (128,128), b_packed (1,128)).
    """
    wt = weight.T.astype(jnp.float32)               # (in, out) so kernel does x @ W^T
    z = jnp.zeros_like(wt)
    w_packed = jnp.block([[wt, z], [z, wt]])        # block-diagonal (128, 128)
    b_packed = jnp.tile(bias.astype(jnp.float32), PACK).reshape(1, LANES)
    return w_packed, b_packed


def _row_tile_cap() -> int:
    """Generation-dependent cap on the packed-row tile (perf review)."""
    kind = ""
    try:
        kind = jax.devices()[0].device_kind.lower()
    except Exception:
        pass
    if "v7" in kind or "7x" in kind:
        return 16384   # ~32 MiB double-buffered in+out; 64 MiB VMEM per v7x TC
    if "v6" in kind:
        return 8192    # ~16 MiB double-buffered in+out
    if "v5" in kind:
        return 4096    # respect v5e's smaller scoped-VMEM budget
    return 4096        # conservative default for unknown generations


def _pick_tile_m(m2: int, cap: int) -> int:
    """Row tile in packed rows.

    Policy per perf review: as large as the generation cap allows, but prefer
    >=4 grid steps (so input/output DMAs overlap across more boundaries) and
    an even step count (both v7x TensorCores get equal work). Multiple of 8
    (f32 sublane), or the full array when it is tiny.
    """
    if m2 <= 8:
        return m2                      # single block == full array dim

    cands = []
    tm = 8
    while tm <= cap and tm <= m2:
        cands.append(tm)
        tm *= 2
    if not cands:
        return 8

    def steps(t):
        return pl.cdiv(m2, t)

    for pred in (lambda s: s >= 4 and s % 2 == 0,   # >=4 steps, even count
                 lambda s: s >= 4,                  # >=4 steps
                 lambda s: s >= 2 and s % 2 == 0,   # >=2 steps, even count
                 lambda s: s >= 2):                 # >=2 steps
        for t in reversed(cands):
            if pred(steps(t)):
                return t
    return cands[-1]


def _vmem_limit_bytes(tm: int) -> int:
    """Explicit scoped-VMEM limit sized from the actual tile usage."""
    tile = tm * LANES * 4                          # one f32 (tm, 128) buffer
    usage = 2 * tile + 2 * tile                    # double-buffered input + output
    usage += 2 * (LANES * LANES * 4 + LANES * 4)   # weight + bias buffers
    return usage + tile + (8 << 20)                # f32 acc temp + compiler headroom


def broadcast_forward(x, w_packed, b_packed):
    """Pallas equivalent of Broadcast.forward: y = Linear(x.view(n, c, 64))."""
    n, c, h, w = x.shape
    assert h == 8 and w == 8
    m = n * c

    x2d = x.reshape(m, FEATS)
    m_main = (m // PACK) * PACK        # even part goes through the kernel
    outs = []

    if m_main:
        m2 = m_main // PACK
        x_packed = x2d[:m_main].reshape(m2, LANES)   # metadata-only for row-major data

        tm = _pick_tile_m(m2, _row_tile_cap())
        grid = (pl.cdiv(m2, tm),)                    # ragged last block masked by Pallas

        out = pl.pallas_call(
            _linear_kernel,
            out_shape=jax.ShapeDtypeStruct((m2, LANES), x.dtype),
            grid_spec=pltpu.PrefetchScalarGridSpec(
                num_scalar_prefetch=0,
                grid=grid,
                in_specs=[
                    pl.BlockSpec((tm, LANES), lambda i: (i, 0)),
                    pl.BlockSpec((LANES, LANES), lambda i: (0, 0)),  # resident weight
                    pl.BlockSpec((1, LANES), lambda i: (0, 0)),      # resident bias
                ],
                out_specs=pl.BlockSpec((tm, LANES), lambda i: (i, 0)),
            ),
            compiler_params=pltpu.CompilerParams(
                dimension_semantics=("parallel",),
                vmem_limit_bytes=_vmem_limit_bytes(tm),
            ),
            cost_estimate=pl.CostEstimate(
                flops=2 * m2 * LANES * LANES,
                bytes_accessed=2 * m2 * LANES * 4 + LANES * LANES * 4,
                transcendentals=0,
            ),
        )(x_packed, w_packed, b_packed)
        outs.append(out.reshape(m_main, FEATS))

    if m != m_main:
        # Single leftover 64-wide row (odd n*c): trivial matvec outside the
        # kernel instead of a full-array jnp.pad (which doubled HBM traffic).
        wt64 = w_packed[:FEATS, :FEATS]
        b64 = b_packed[:, :FEATS]
        tail = (x2d[m_main:].astype(jnp.float32) @ wt64 + b64).astype(x.dtype)
        outs.append(tail)

    y2d = outs[0] if len(outs) == 1 else jnp.concatenate(outs, axis=0)
    return y2d.reshape(n, c, h, w)


def init_linear_params(key, num_features=FEATS):
    """Deterministic init mimicking nn.Linear's default (uniform +- 1/sqrt(fan_in))."""
    kw, kb = jax.random.split(key)
    bound = 1.0 / math.sqrt(num_features)
    weight = jax.random.uniform(kw, (num_features, num_features),
                                jnp.float32, -bound, bound)
    bias = jax.random.uniform(kb, (num_features,), jnp.float32, -bound, bound)
    return weight, bias


if __name__ == "__main__":
    key = jax.random.PRNGKey(0)
    kx, kp = jax.random.split(key)

    weight, bias = init_linear_params(kp)
    # Hoisted packing: done once, reused for every forward call.
    w_packed, b_packed = pack_broadcast_params(weight, bias)

    ok = True
    # Cases: even m (copy-free packing, single block), odd m (tail matvec),
    # ragged last block, and a multi-step even-length grid.
    for (n, c) in ((2, 4), (3, 5), (4, 9), (4, 64)):
        kx, sub = jax.random.split(kx)
        x = jax.random.normal(sub, (n, c, 8, 8), dtype=jnp.float32)
        y = broadcast_forward(x, w_packed, b_packed)
        jax.block_until_ready(y)

        y_ref = (x.reshape(n, c, 64) @ weight.T + bias).reshape(n, c, 8, 8)
        ok &= (y.shape == (n, c, 8, 8))
        ok &= bool(jnp.allclose(y, y_ref, atol=1e-5, rtol=1e-5))

    if ok:
        print("KERNEL_OK")
</pallas_src>

<mosaic_0001>
module attributes {stable_mosaic.version = 11 : i64} {
  func.func @_linear_kernel(%arg0: i32, %arg1: memref<4x128xf32, #tpu.memory_space<vmem>>, %arg2: memref<128x128xf32, #tpu.memory_space<vmem>>, %arg3: memref<1x128xf32, #tpu.memory_space<vmem>>, %arg4: memref<4x128xf32, #tpu.memory_space<vmem>>) attributes {dimension_semantics = [#tpu.dimension_semantics<parallel>], iteration_bounds = array<i64: 1>, scalar_prefetch = 0 : i64, scratch_operands = 0 : i64, tpu.core_type = #tpu.core_type<tc>, window_params = [{transform_indices = @transform_0, window_bounds = array<i64: 4, 128>}, {pipeline_mode = #tpu.pipeline_mode<synchronous>, transform_indices = @transform_1, window_bounds = array<i64: 128, 128>}, {pipeline_mode = #tpu.pipeline_mode<synchronous>, transform_indices = @transform_2, window_bounds = array<i64: 1, 128>}, {transform_indices = @transform_3, window_bounds = array<i64: 4, 128>}]} {
    %c0 = arith.constant 0 : index
    %c0_0 = arith.constant 0 : index
    %0 = vector.load %arg1[%c0, %c0_0] : memref<4x128xf32, #tpu.memory_space<vmem>>, vector<4x128xf32>
    %c0_1 = arith.constant 0 : index
    %c0_2 = arith.constant 0 : index
    %1 = vector.load %arg2[%c0_1, %c0_2] : memref<128x128xf32, #tpu.memory_space<vmem>>, vector<128x128xf32>
    %cst = arith.constant dense<0.000000e+00> : vector<4x128xf32>
    %2 = tpu.matmul %0, %1, %cst {dimension_numbers = #tpu.dot_dimension_numbers<[1], [0], [0], [1], [0, 0, 1, 1], [], []>} : vector<4x128xf32>, vector<128x128xf32>, vector<4x128xf32> -> vector<4x128xf32>
    %c0_3 = arith.constant 0 : index
    %c0_4 = arith.constant 0 : index
    %3 = vector.load %arg3[%c0_3, %c0_4] : memref<1x128xf32, #tpu.memory_space<vmem>>, vector<1x128xf32>
    %4 = vector.broadcast %3 : vector<1x128xf32> to vector<4x128xf32>
    %5 = arith.addf %2, %4 : vector<4x128xf32>
    %c0_5 = arith.constant 0 : index
    %c0_6 = arith.constant 0 : index
    %6 = vector.load %arg4[%c0_5, %c0_6] : memref<4x128xf32, #tpu.memory_space<vmem>>, vector<4x128xf32>
    tpu.vector_store %arg4[%c0_5, %c0_6], %5 {strides = array<i32>} : memref<4x128xf32, #tpu.memory_space<vmem>>, vector<4x128xf32>,
    return
  }
  func.func @transform_0(%arg0: i32) -> (i32, i32) {
    %c0_i32 = arith.constant 0 : i32
    %c0_i32_0 = arith.constant 0 : i32
    return %arg0, %c0_i32 : i32, i32
  }
  func.func @transform_1(%arg0: i32) -> (i32, i32) {
    %c0_i32 = arith.constant 0 : i32
    %c0_i32_0 = arith.constant 0 : i32
    %c0_i32_1 = arith.constant 0 : i32
    return %c0_i32, %c0_i32_0 : i32, i32
  }
  func.func @transform_2(%arg0: i32) -> (i32, i32) {
    %c0_i32 = arith.constant 0 : i32
    %c0_i32_0 = arith.constant 0 : i32
    %c0_i32_1 = arith.constant 0 : i32
    return %c0_i32, %c0_i32_0 : i32, i32
  }
  func.func @transform_3(%arg0: i32) -> (i32, i32) {
    %c0_i32 = arith.constant 0 : i32
    %c0_i32_0 = arith.constant 0 : i32
    return %arg0, %c0_i32 : i32, i32
  }
}

</mosaic_0001>

<bundles_post_ra>
// kernel: tpu_custom_call.1
= control target key start
LH: loop header
LB: loop body
LE: loop exit
PB: predicated region body
PF: predicated region fallthrough
CT: control target
= control target key end

     0   :  { %8 = vsyncpa [#allocation3], 0  ;;  %s226_s0 = inlined_call_operand.hbm [shape: f32[4,128], index: 0, kind: input, shape index: {}]   ;;  %s227_s1 = inlined_call_operand.hbm [shape: f32[128,128], index: 1, kind: input, shape index: {}]   ;;  %s228_s2 = inlined_call_operand.vmem [shape: f32[1,128], index: 2, kind: input, shape index: {}]   ;;  %s229_s3 = inlined_call_operand.hbm [shape: f32[4,128], index: 3, kind: output, shape index: {}]  }
   0x1   :  { %9 = vsyncpa [#allocation6], 0 }
   0x2   :  { %10 = vsyncpa [#allocation4], 0  ;;  %s16_s14 = sshll.u32 %s226_s0, 4  ;;  %s189_s15 = smov [#allocation2]   ;;  %s17_s14 = int_to_ptr.hbm [resolvable:$true] %s16_s14 }
   0x3   :  { %s18_s16 = sshll.u32 %s189_s15, 4  ;;  %s26_s19 = sshll.u32 %s227_s1, 4  ;;  %s19_s16 = int_to_ptr.vmem [resolvable:$true] %s18_s16  ;;  %s27_s19 = int_to_ptr.hbm [resolvable:$true] %s26_s19 }
   0x4   :  { %21 = dma.hbm_to_vmem [thread:$0]  %s17_s14, 64, %s19_s16, [#allocation3]  }
   0x5   :  { %s190_s20 = smov [#allocation5]   ;;  %s191_s22 = smov 128  }
   0x6   :  { %s28_s21 = sshll.u32 %s190_s20, 4  ;;  %s192_s23 = smov 8   ;;  %s29_s21 = int_to_ptr.vmem [resolvable:$true] %s28_s21 }
   0x7   :  { %34 = dma.hbm_to_vmem [thread:$0]  %s27_s19, 2048, %s29_s21, [#allocation6], %s191_s22, %s191_s22, %s192_s23  }
   0x8   :  { %183 = dma.done.wait [#allocation3], 64  }
   0x9   :  { %184 = vsyncadd [#allocation3], 4294967232 }
   0xa   :  { %185 = dma.done.wait [#allocation6], 2048  }
   0xb   :  { %186 = vsyncadd [#allocation6], 4294965248  ;;  %v61_v0 = vld [vmem:[#allocation5 + $0x78] sm:$0xff]  ;;  %v60_v1 = vld [vmem:[#allocation5 + $0x70] sm:$0xff]  ;;  %s193_s24 = smov [#allocation7]   ;;  %s94_s28 = sshll.u32 %s229_s3, 4  ;;  %s95_s28 = int_to_ptr.hbm [resolvable:$true] %s94_s28 }
   0xc   :  { %66 = vmatpush.msra.mxu0 %v61_v0  ;;  %v59_v2 = vld [vmem:[#allocation5 + $0x68] sm:$0xff]  ;;  %v58_v3 = vld [vmem:[#allocation5 + $0x60] sm:$0xff]  ;;  %v57_v4 = vld [vmem:[#allocation5 + $0x58] sm:$0xff]  ;;  %s92_s25 = sshll.u32 %s193_s24, 4  ;;  %s93_s25 = int_to_ptr.vmem [resolvable:$true] %s92_s25 }
   0xd   :  { %v56_v5 = vld [vmem:[#allocation5 + $0x50] sm:$0xff]  ;;  %v55_v6 = vld [vmem:[#allocation5 + $0x48] sm:$0xff]  ;;  %v54_v7 = vld [vmem:[#allocation5 + $0x40] sm:$0xff] }
   0xe   :  { %67 = vmatpush.msra.mxu0 %v60_v1  ;;  %v53_v8 = vld [vmem:[#allocation5 + $0x38] sm:$0xff]  ;;  %v52_v9 = vld [vmem:[#allocation5 + $0x30] sm:$0xff]  ;;  %v51_v10 = vld [vmem:[#allocation5 + $0x28] sm:$0xff] }
   0xf   :  { %v50_v11 = vld [vmem:[#allocation5 + $0x20] sm:$0xff]  ;;  %v49_v12 = vld [vmem:[#allocation5 + $0x18] sm:$0xff]  ;;  %v48_v13 = vld [vmem:[#allocation5 + $0x10] sm:$0xff] }
  0x10   :  { %68 = vmatpush.msra.mxu0 %v59_v2  ;;  %v47_v14 = vld [vmem:[#allocation5 + $0x8] sm:$0xff]  ;;  %v46_v15 = vld [vmem:[#allocation5] sm:$0xff]  ;;  %v45_v16 = vld [vmem:[#allocation2] sm:$0xf] }
  0x11   :  { %v110_v17 = vld [vmem:[%s228_s2] ss:$0 sm:$0xff] }
  0x12   :  { %69 = vmatpush.msra.mxu0 %v58_v3 }
  0x14   :  { %70 = vmatpush.msra.mxu0 %v57_v4 }
  0x16   :  { %71 = vmatpush.msra.mxu0 %v56_v5 }
  0x18   :  { %72 = vmatpush.msra.mxu0 %v55_v6 }
  0x1a   :  { %73 = vmatpush.msra.mxu0 %v54_v7 }
  0x1c   :  { %74 = vmatpush.msra.mxu0 %v53_v8 }
  0x1e   :  { %75 = vmatpush.msra.mxu0 %v52_v9 }
  0x20   :  { %76 = vmatpush.msra.mxu0 %v51_v10 }
  0x22   :  { %77 = vmatpush.msra.mxu0 %v50_v11 }
  0x24   :  { %78 = vmatpush.msra.mxu0 %v49_v12 }
  0x26   :  { %79 = vmatpush.msra.mxu0 %v48_v13 }
  0x28   :  { %80 = vmatpush.msra.mxu0 %v47_v14 }
  0x2a   :  { %81 = vmatpush.msra.mxu0 %v46_v15 }
  0x2b   :  { %82 = vmatmul.f32.vlgmr.msra.gmra.mxu0 %v45_v16 }
  0xa8   :  { %v83_v18 = vpop.f32.mrf.mxu0 }
  0xa9   :  { %v84_v19 = vadd.f32 %v110_v17, %v83_v18 }
  0xab   :  { %86 = vst [vmem:[#allocation7] sm:$0xf] %v84_v19 }
  0xac   :  { %97 = dma.vmem_to_hbm [thread:$0]  %s93_s25, 64, %s95_s28, [#allocation4]  }
  0xad   :  { %187 = dma.done.wait [#allocation4], 64  }
  0xae   :  { %188 = vsyncadd [#allocation4], 4294967232 }
  0xaf   :  { %102 = vsyncpa [#allocation3], 1 }
  0xb0   :  { %103 = vsyncpa [#allocation6], 1 }
  0xb1   :  { %104 = vsyncpa [#allocation4], 1 }

</bundles_post_ra>
